<compile_context>
chip_gen: v6e
topology: v6e:2x2x1
jax: 0.10.0
libtpu: 0.0.40
codegen_flags: <defaults>
</compile_context>

<pallas_src>
import math
import functools

import jax
import jax.numpy as jnp
from jax.experimental import pallas as pl
from jax.experimental.pallas import tpu as pltpu


# Scoped-VMEM budget: ~75% of physical VMEM, capped at 100 MiB.
# v5e/v6e (128 MiB physical) -> 96-100 MiB; v7x (64 MiB) -> 48 MiB.
try:
    _VMEM_CAP = int(pltpu.get_tpu_info().vmem_capacity_bytes)
except Exception:  # query unavailable -> assume the smallest (v7x) budget
    _VMEM_CAP = 64 * 1024 * 1024
_VMEM_LIMIT = int(min(100 * 1024 * 1024, (_VMEM_CAP * 3) // 4))

# Bigger tiles when VMEM is plentiful (amortizes ~0.35 us per grid step).
_DEF_TILE = 512 if _VMEM_CAP >= 100 * 1024 * 1024 else 256


# TODO(synk): HF ELECTRA uses exact erf-GELU; tanh-approximate GELU is used here.
def _gelu(x):
    c = math.sqrt(2.0 / math.pi)
    return 0.5 * x * (1.0 + jnp.tanh(c * (x + 0.044715 * x * x * x)))


def _fit(dim, pref, align=8):
    """Largest `align`-multiple divisor of `dim` that is <= pref.

    Bounded fallback: never silently explodes to a huge full-dimension tile
    unless `dim` has no aligned divisor at all (then the full dim is the only
    legal tile anyway).
    """
    if dim <= pref:
        return dim
    pref = max((pref // align) * align, align)
    for t in range(pref, align - 1, -align):
        if dim % t == 0:
            return t
    return dim


# ----------------------------- Pallas kernels ------------------------------

def _matmul_kernel(x_ref, w_ref, b_ref, o_ref, acc_ref, *, activation):
    """Tiled matmul; accumulator seeded with the bias; optional GELU epilogue."""
    @pl.when(pl.program_id(2) == 0)
    def _():
        acc_ref[...] = jnp.broadcast_to(b_ref[...].astype(jnp.float32),
                                        acc_ref.shape)

    acc_ref[...] += jnp.dot(x_ref[...], w_ref[...],
                            preferred_element_type=jnp.float32)

    @pl.when(pl.program_id(2) == pl.num_programs(2) - 1)
    def _():
        y = acc_ref[...]
        if activation == "gelu":
            y = _gelu(y)
        o_ref[...] = y.astype(o_ref.dtype)


def linear(x, w, b, activation=None, out_dtype=jnp.bfloat16,
           tm=None, tn=None, tk=None):
    m, k = x.shape
    n = w.shape[1]
    tm = _fit(m, tm or _DEF_TILE, align=8)
    tn = _fit(n, tn or _DEF_TILE, align=128)
    # Collapse the K grid axis when the contraction fits VMEM (it always does
    # for ELECTRA-sized H / 3H): one long MXU contraction per output tile.
    if tk is None and k <= 2048:
        tk = k
    else:
        tk = _fit(k, tk or _DEF_TILE, align=128)
    kern = functools.partial(_matmul_kernel, activation=activation)
    return pl.pallas_call(
        kern,
        out_shape=jax.ShapeDtypeStruct((m, n), out_dtype),
        grid=(m // tm, n // tn, k // tk),
        in_specs=[
            pl.BlockSpec((tm, tk), lambda i, j, kk: (i, kk)),
            pl.BlockSpec((tk, tn), lambda i, j, kk: (kk, j)),
            pl.BlockSpec((1, tn), lambda i, j, kk: (0, j)),
        ],
        out_specs=pl.BlockSpec((tm, tn), lambda i, j, kk: (i, j)),
        scratch_shapes=[pltpu.VMEM((tm, tn), jnp.float32)],
        compiler_params=pltpu.CompilerParams(
            dimension_semantics=("parallel", "parallel", "arbitrary"),
            vmem_limit_bytes=_VMEM_LIMIT),
    )(x.astype(jnp.bfloat16), w, b.reshape(1, n))


def _ln_kernel(x_ref, g_ref, b_ref, o_ref, *, eps):
    x = x_ref[...].astype(jnp.float32)
    mu = jnp.mean(x, axis=-1, keepdims=True)
    var = jnp.mean((x - mu) ** 2, axis=-1, keepdims=True)
    y = (x - mu) * jax.lax.rsqrt(var + eps)
    o_ref[...] = (y * g_ref[...] + b_ref[...]).astype(o_ref.dtype)


def layernorm(x, gamma, beta, eps=1e-12, tm=None):
    m, h = x.shape
    tm = _fit(m, tm or _DEF_TILE, align=8)
    kern = functools.partial(_ln_kernel, eps=eps)
    return pl.pallas_call(
        kern,
        out_shape=jax.ShapeDtypeStruct((m, h), jnp.bfloat16),
        grid=(m // tm,),
        in_specs=[pl.BlockSpec((tm, h), lambda i: (i, 0)),
                  pl.BlockSpec((1, h), lambda i: (0, 0)),
                  pl.BlockSpec((1, h), lambda i: (0, 0))],
        out_specs=pl.BlockSpec((tm, h), lambda i: (i, 0)),
        compiler_params=pltpu.CompilerParams(
            dimension_semantics=("parallel",),
            vmem_limit_bytes=_VMEM_LIMIT),
    )(x, gamma.reshape(1, h), beta.reshape(1, h))


def _attn_kernel(qkv_ref, bias_ref, o_ref, ctx_ref, *, nh, dh):
    """All heads of one batch element per grid step.

    Per-head context tiles are written into an (S, H) f32 VMEM scratch (no
    concatenate -> no vreg spills), then cast + stored lane-dense once.
    The 1/sqrt(dh) scale is already folded into the QKV weights.
    """
    qkv = qkv_ref[...]                              # (S, 3H) bf16
    bias = bias_ref[...].astype(jnp.float32)        # (1, S)  additive mask bias
    h = nh * dh
    for hd in range(nh):
        q = qkv[:, hd * dh:(hd + 1) * dh]
        k = qkv[:, h + hd * dh:h + (hd + 1) * dh]
        v = qkv[:, 2 * h + hd * dh:2 * h + (hd + 1) * dh]
        # trans_b style contraction: no k.T relayout, MXU consumes K directly.
        s = jax.lax.dot_general(q, k, (((1,), (1,)), ((), ())),
                                preferred_element_type=jnp.float32)
        s = s + bias
        m = jnp.max(s, axis=-1, keepdims=True)
        p = jnp.exp(s - m)
        inv = 1.0 / jnp.sum(p, axis=-1, keepdims=True)   # exact; (S,1) only
        p = p * inv
        ctx = jnp.dot(p.astype(jnp.bfloat16), v,
                      preferred_element_type=jnp.float32)
        ctx_ref[:, hd * dh:(hd + 1) * dh] = ctx
    o_ref[...] = ctx_ref[...].astype(o_ref.dtype)


def attention(qkv, mask_bias, num_heads, head_dim):
    # NOTE: for long sequences (S >= 1024) a flash-style key-tiled kernel with
    # online softmax would bound the (S,S) working set; ELECTRA sequence
    # lengths here keep the full-score formulation comfortably inside VMEM.
    b, s, three_h = qkv.shape
    h = num_heads * head_dim
    kern = functools.partial(_attn_kernel, nh=num_heads, dh=head_dim)
    return pl.pallas_call(
        kern,
        out_shape=jax.ShapeDtypeStruct((b, s, h), jnp.bfloat16),
        grid=(b,),
        in_specs=[pl.BlockSpec((None, s, three_h), lambda i: (i, 0, 0)),
                  pl.BlockSpec((None, 1, s), lambda i: (i, 0, 0))],
        out_specs=pl.BlockSpec((None, s, h), lambda i: (i, 0, 0)),
        scratch_shapes=[pltpu.VMEM((s, h), jnp.float32)],
        compiler_params=pltpu.CompilerParams(
            dimension_semantics=("parallel",),
            vmem_limit_bytes=_VMEM_LIMIT),
    )(qkv, mask_bias)


def _proj_res_ln_kernel(x_ref, w_ref, b_ref, r_ref, g_ref, be_ref, o_ref, *, eps):
    y = jnp.dot(x_ref[...], w_ref[...], preferred_element_type=jnp.float32)
    y = y + b_ref[...] + r_ref[...].astype(jnp.float32)
    mu = jnp.mean(y, axis=-1, keepdims=True)
    var = jnp.mean((y - mu) ** 2, axis=-1, keepdims=True)
    yn = (y - mu) * jax.lax.rsqrt(var + eps)
    o_ref[...] = (yn * g_ref[...] + be_ref[...]).astype(o_ref.dtype)


def proj_residual_layernorm(x, w, b, residual, gamma, beta, eps=1e-12, tm=None):
    """out = LayerNorm(x @ w + b + residual) — attn output projection epilogue."""
    m, k = x.shape
    n = w.shape[1]
    tm = _fit(m, tm or _DEF_TILE, align=8)
    kern = functools.partial(_proj_res_ln_kernel, eps=eps)
    return pl.pallas_call(
        kern,
        out_shape=jax.ShapeDtypeStruct((m, n), jnp.bfloat16),
        grid=(m // tm,),
        in_specs=[pl.BlockSpec((tm, k), lambda i: (i, 0)),
                  # constant-index weight: single-buffer (halves its VMEM)
                  pl.BlockSpec((k, n), lambda i: (0, 0),
                               pipeline_mode=pl.Buffered(1)),
                  pl.BlockSpec((1, n), lambda i: (0, 0)),
                  pl.BlockSpec((tm, n), lambda i: (i, 0)),
                  pl.BlockSpec((1, n), lambda i: (0, 0)),
                  pl.BlockSpec((1, n), lambda i: (0, 0))],
        out_specs=pl.BlockSpec((tm, n), lambda i: (i, 0)),
        compiler_params=pltpu.CompilerParams(
            dimension_semantics=("parallel",),
            vmem_limit_bytes=_VMEM_LIMIT),
    )(x.astype(jnp.bfloat16), w, b.reshape(1, n), residual,
      gamma.reshape(1, n), beta.reshape(1, n))


def _ffn_ln_kernel(x_ref, w1_ref, b1_ref, w2_ref, b2_ref, g_ref, be_ref, o_ref,
                   *, eps):
    x = x_ref[...]                                            # (tm, H) bf16
    h1 = jnp.dot(x, w1_ref[...], preferred_element_type=jnp.float32) + b1_ref[...]
    h1 = _gelu(h1)                                            # (tm, inter) f32, VMEM only
    y = jnp.dot(h1.astype(jnp.bfloat16), w2_ref[...],
                preferred_element_type=jnp.float32)
    y = y + b2_ref[...] + x.astype(jnp.float32)               # residual = FFN input
    mu = jnp.mean(y, axis=-1, keepdims=True)
    var = jnp.mean((y - mu) ** 2, axis=-1, keepdims=True)
    yn = (y - mu) * jax.lax.rsqrt(var + eps)
    o_ref[...] = (yn * g_ref[...] + be_ref[...]).astype(o_ref.dtype)


def ffn_residual_layernorm(x, w1, b1, w2, b2, gamma, beta, eps=1e-12, tm=None):
    """out = LayerNorm(GELU(x @ w1 + b1) @ w2 + b2 + x); intermediate stays in VMEM."""
    m, h = x.shape
    inter = w1.shape[1]
    if tm is None:
        # Keep row tile modest when VMEM is tight (v7x) so that the resident
        # weights + the f32 (tm, inter) intermediate stay well under budget.
        tm = _DEF_TILE if _VMEM_CAP >= 100 * 1024 * 1024 else 128
    tm = _fit(m, tm, align=8)
    kern = functools.partial(_ffn_ln_kernel, eps=eps)
    return pl.pallas_call(
        kern,
        out_shape=jax.ShapeDtypeStruct((m, h), jnp.bfloat16),
        grid=(m // tm,),
        in_specs=[pl.BlockSpec((tm, h), lambda i: (i, 0)),
                  # constant-index weights: single-buffer (saves ~half their VMEM)
                  pl.BlockSpec((h, inter), lambda i: (0, 0),
                               pipeline_mode=pl.Buffered(1)),
                  pl.BlockSpec((1, inter), lambda i: (0, 0)),
                  pl.BlockSpec((inter, h), lambda i: (0, 0),
                               pipeline_mode=pl.Buffered(1)),
                  pl.BlockSpec((1, h), lambda i: (0, 0)),
                  pl.BlockSpec((1, h), lambda i: (0, 0)),
                  pl.BlockSpec((1, h), lambda i: (0, 0))],
        out_specs=pl.BlockSpec((tm, h), lambda i: (i, 0)),
        compiler_params=pltpu.CompilerParams(
            dimension_semantics=("parallel",),
            vmem_limit_bytes=_VMEM_LIMIT),
    )(x, w1, b1.reshape(1, inter), w2, b2.reshape(1, h),
      gamma.reshape(1, h), beta.reshape(1, h))


# ------------------------ parameters & model glue ---------------------------

def init_params(key, vocab, max_pos, type_vocab, h, inter, nlayers, nlabels,
                num_heads):
    def nrm(k, shape):
        return 0.02 * jax.random.normal(k, shape, jnp.float32)

    dh = h // num_heads
    q_scale = 1.0 / math.sqrt(dh)   # folded into the Q columns of w_qkv/b_qkv

    keys = iter(jax.random.split(key, 8 + 6 * nlayers))
    p = {
        "word_emb": nrm(next(keys), (vocab, h)),
        "pos_emb": nrm(next(keys), (max_pos, h)),
        "type_emb": nrm(next(keys), (type_vocab, h)),
        "emb_ln_g": jnp.ones((h,), jnp.float32),
        "emb_ln_b": jnp.zeros((h,), jnp.float32),
        "layers": [],
    }
    for _ in range(nlayers):
        wq = nrm(next(keys), (h, h)) * q_scale
        wk = nrm(next(keys), (h, h))
        wv = nrm(next(keys), (h, h))
        p["layers"].append({
            # fused Q/K/V projection weight [H, 3H]; 1/sqrt(dh) baked into Q part
            "w_qkv": jnp.concatenate([wq, wk, wv], axis=1).astype(jnp.bfloat16),
            "b_qkv": jnp.zeros((3 * h,), jnp.float32),
            "wo": nrm(next(keys), (h, h)).astype(jnp.bfloat16),
            "bo": jnp.zeros((h,), jnp.float32),
            "ln1_g": jnp.ones((h,), jnp.float32),
            "ln1_b": jnp.zeros((h,), jnp.float32),
            "w1": nrm(next(keys), (h, inter)).astype(jnp.bfloat16),
            "b1": jnp.zeros((inter,), jnp.float32),
            "w2": nrm(next(keys), (inter, h)).astype(jnp.bfloat16),
            "b2": jnp.zeros((h,), jnp.float32),
            "ln2_g": jnp.ones((h,), jnp.float32),
            "ln2_b": jnp.zeros((h,), jnp.float32),
        })
    p["cls_dense_w"] = nrm(next(keys), (h, h))
    p["cls_dense_b"] = jnp.zeros((h,), jnp.float32)
    p["cls_out_w"] = nrm(next(keys), (h, nlabels))
    p["cls_out_b"] = jnp.zeros((nlabels,), jnp.float32)
    return p


def model_forward(x, params, num_heads):
    """Mirror of Model.forward: context = x[0], mask = x[2], return logits."""
    context = x[0]
    mask = x[2]
    b, s = context.shape
    h = params["word_emb"].shape[1]
    dh = h // num_heads

    # Additive attention-mask bias, computed once (outside the layer loop).
    mask_bias = ((1.0 - mask.astype(jnp.float32)) * (-1e9)).reshape(b, 1, s)

    # Embeddings (gather is glue; LayerNorm is the Pallas kernel).  Cast to
    # bf16 before the LN kernel to halve its input DMA traffic.
    emb = (jnp.take(params["word_emb"], context, axis=0)
           + params["pos_emb"][:s][None, :, :]
           + params["type_emb"][0][None, None, :])
    hid = layernorm(emb.astype(jnp.bfloat16).reshape(b * s, h),
                    params["emb_ln_g"], params["emb_ln_b"])          # bf16 [B*S, H]

    for lp in params["layers"]:
        # Fused QKV projection: one matmul, one HBM read of `hid`.
        qkv = linear(hid, lp["w_qkv"], lp["b_qkv"])                   # [B*S, 3H]

        # Attention over all heads of a batch element per grid step;
        # context comes back in [B, S, H] layout directly (no transposes).
        ctx = attention(qkv.reshape(b, s, 3 * h), mask_bias, num_heads, dh)
        ctx = ctx.reshape(b * s, h)

        # Output projection + bias + residual + LayerNorm fused.
        hid1 = proj_residual_layernorm(ctx, lp["wo"], lp["bo"], hid,
                                       lp["ln1_g"], lp["ln1_b"])

        # FFN (GELU) + residual + LayerNorm fused; [B*S, inter] stays in VMEM.
        hid = ffn_residual_layernorm(hid1, lp["w1"], lp["b1"],
                                     lp["w2"], lp["b2"],
                                     lp["ln2_g"], lp["ln2_b"])

    # Classification head on [CLS]: tiny matmuls (B x H and B x num_labels),
    # done with plain jnp -- two pallas_call launches + a 3-lane masked store
    # would be pure overhead.
    cls = hid.reshape(b, s, h)[:, 0, :].astype(jnp.float32)           # [B, H]
    t = _gelu(cls @ params["cls_dense_w"] + params["cls_dense_b"])
    logits = t @ params["cls_out_w"] + params["cls_out_b"]
    return logits                                                     # [B, num_labels]


if __name__ == "__main__":
    # Small ELECTRA config.
    B, S = 2, 8
    VOCAB, MAX_POS, TYPE_VOCAB = 100, 64, 2
    H, NUM_HEADS, INTER, NLAYERS, NUM_LABELS = 32, 2, 64, 2, 3

    key = jax.random.PRNGKey(0)
    k_param, k_ids = jax.random.split(key)

    params = init_params(k_param, VOCAB, MAX_POS, TYPE_VOCAB, H, INTER,
                         NLAYERS, NUM_LABELS, NUM_HEADS)

    context = jax.random.randint(k_ids, (B, S), 0, VOCAB, dtype=jnp.int32)
    seq_len = jnp.array([S, S - 2], dtype=jnp.int32)                  # unused (x[1])
    mask = jnp.array([[1] * S, [1] * (S - 2) + [0] * 2], dtype=jnp.int32)
    x = (context, seq_len, mask)

    logits = model_forward(x, params, NUM_HEADS)
    logits = jax.block_until_ready(logits)
    assert logits.shape == (B, NUM_LABELS)
    assert bool(jnp.all(jnp.isfinite(logits)))
    print("KERNEL_OK")
</pallas_src>

<mosaic_0001>
module attributes {stable_mosaic.version = 11 : i64} {
  func.func @_ln_kernel(%arg0: i32, %arg1: memref<16x32xbf16, #tpu.memory_space<vmem>>, %arg2: memref<1x32xf32, #tpu.memory_space<vmem>>, %arg3: memref<1x32xf32, #tpu.memory_space<vmem>>, %arg4: memref<16x32xbf16, #tpu.memory_space<vmem>>) attributes {dimension_semantics = [#tpu.dimension_semantics<parallel>], iteration_bounds = array<i64: 1>, scalar_prefetch = 0 : i64, scratch_operands = 0 : i64, tpu.core_type = #tpu.core_type<tc>, window_params = [{transform_indices = @transform_0, window_bounds = array<i64: 16, 32>}, {pipeline_mode = #tpu.pipeline_mode<synchronous>, transform_indices = @transform_1, window_bounds = array<i64: 1, 32>}, {pipeline_mode = #tpu.pipeline_mode<synchronous>, transform_indices = @transform_2, window_bounds = array<i64: 1, 32>}, {transform_indices = @transform_3, window_bounds = array<i64: 16, 32>}]} {
    %c0 = arith.constant 0 : index
    %c0_0 = arith.constant 0 : index
    %0 = vector.load %arg1[%c0, %c0_0] : memref<16x32xbf16, #tpu.memory_space<vmem>>, vector<16x32xbf16>
    %1 = arith.extf %0 : vector<16x32xbf16> to vector<16x32xf32>
    %cst = arith.constant dense<0.000000e+00> : vector<16xf32>
    %2 = vector.multi_reduction <add>, %1, %cst [1] : vector<16x32xf32> to vector<16xf32>
    %3 = vector.shape_cast %2 : vector<16xf32> to vector<16x1xf32>
    %cst_1 = arith.constant 3.200000e+01 : f32
    %4 = vector.broadcast %cst_1 : f32 to vector<16x1xf32>
    %5 = arith.divf %3, %4 : vector<16x1xf32>
    %6 = vector.broadcast %5 : vector<16x1xf32> to vector<16x32xf32>
    %7 = arith.subf %1, %6 : vector<16x32xf32>
    %8 = arith.mulf %7, %7 : vector<16x32xf32>
    %cst_2 = arith.constant dense<0.000000e+00> : vector<16xf32>
    %9 = vector.multi_reduction <add>, %8, %cst_2 [1] : vector<16x32xf32> to vector<16xf32>
    %10 = vector.shape_cast %9 : vector<16xf32> to vector<16x1xf32>
    %cst_3 = arith.constant 3.200000e+01 : f32
    %11 = vector.broadcast %cst_3 : f32 to vector<16x1xf32>
    %12 = arith.divf %10, %11 : vector<16x1xf32>
    %13 = vector.broadcast %5 : vector<16x1xf32> to vector<16x32xf32>
    %14 = arith.subf %1, %13 : vector<16x32xf32>
    %cst_4 = arith.constant 9.99999996E-13 : f32
    %15 = vector.broadcast %cst_4 : f32 to vector<16x1xf32>
    %16 = arith.addf %12, %15 : vector<16x1xf32>
    %17 = math.rsqrt %16 : vector<16x1xf32>
    %18 = vector.broadcast %17 : vector<16x1xf32> to vector<16x32xf32>
    %19 = arith.mulf %14, %18 : vector<16x32xf32>
    %c0_5 = arith.constant 0 : index
    %c0_6 = arith.constant 0 : index
    %20 = vector.load %arg2[%c0_5, %c0_6] : memref<1x32xf32, #tpu.memory_space<vmem>>, vector<1x32xf32>
    %21 = vector.broadcast %20 : vector<1x32xf32> to vector<16x32xf32>
    %22 = arith.mulf %19, %21 : vector<16x32xf32>
    %c0_7 = arith.constant 0 : index
    %c0_8 = arith.constant 0 : index
    %23 = vector.load %arg3[%c0_7, %c0_8] : memref<1x32xf32, #tpu.memory_space<vmem>>, vector<1x32xf32>
    %24 = vector.broadcast %23 : vector<1x32xf32> to vector<16x32xf32>
    %25 = arith.addf %22, %24 : vector<16x32xf32>
    %26 = arith.truncf %25 : vector<16x32xf32> to vector<16x32xbf16>
    %c0_9 = arith.constant 0 : index
    %c0_10 = arith.constant 0 : index
    %27 = vector.load %arg4[%c0_9, %c0_10] : memref<16x32xbf16, #tpu.memory_space<vmem>>, vector<16x32xbf16>
    tpu.vector_store %arg4[%c0_9, %c0_10], %26 {strides = array<i32>} : memref<16x32xbf16, #tpu.memory_space<vmem>>, vector<16x32xbf16>,
    return
  }
  func.func @transform_0(%arg0: i32) -> (i32, i32) {
    %c0_i32 = arith.constant 0 : i32
    %c0_i32_0 = arith.constant 0 : i32
    return %arg0, %c0_i32 : i32, i32
  }
  func.func @transform_1(%arg0: i32) -> (i32, i32) {
    %c0_i32 = arith.constant 0 : i32
    %c0_i32_0 = arith.constant 0 : i32
    %c0_i32_1 = arith.constant 0 : i32
    return %c0_i32, %c0_i32_0 : i32, i32
  }
  func.func @transform_2(%arg0: i32) -> (i32, i32) {
    %c0_i32 = arith.constant 0 : i32
    %c0_i32_0 = arith.constant 0 : i32
    %c0_i32_1 = arith.constant 0 : i32
    return %c0_i32, %c0_i32_0 : i32, i32
  }
  func.func @transform_3(%arg0: i32) -> (i32, i32) {
    %c0_i32 = arith.constant 0 : i32
    %c0_i32_0 = arith.constant 0 : i32
    return %arg0, %c0_i32 : i32, i32
  }
}

</mosaic_0001>

<bundles_post_ra>
// kernel: tpu_custom_call.1
= control target key start
LH: loop header
LB: loop body
LE: loop exit
PB: predicated region body
PF: predicated region fallthrough
CT: control target
= control target key end

     0   :  { %8 = vsyncpa [#allocation3], 0  ;;  %s215_s0 = inlined_call_operand.hbm [shape: bf16[16,32], index: 0, kind: input, shape index: {}]   ;;  %s216_s1 = inlined_call_operand.vmem [shape: f32[1,32], index: 1, kind: input, shape index: {}]   ;;  %s217_s2 = inlined_call_operand.vmem [shape: f32[1,32], index: 2, kind: input, shape index: {}]   ;;  %s218_s3 = inlined_call_operand.hbm [shape: bf16[16,32], index: 3, kind: output, shape index: {}]  }
   0x1   :  { %9 = vsyncpa [#allocation4], 0  ;;  %s169_s12 = smov [#allocation2]  }
   0x2   :  { %s15_s13 = sshll.u32 %s169_s12, 4  ;;  %s16_s13 = int_to_ptr.vmem [resolvable:$true] %s15_s13 }
   0x3   :  { %s133_s14 = scalar_lea.vmem %s16_s13, 128  ;;  %p138_p1 = scmp.lt.s32.totalorder %s16_s13, %s16_s13 }
   0x4   :  { %p134_p0 = scmp.ne.s32.totalorder %s16_s13, %s133_s14  ;;  %p139_p2 = scmp.lt.s32.totalorder %s133_s14, %s133_s14 }
   0x6   :  { %p140_p3 = por %p139_p2, %p138_p1 }
   0x8   :  { %p141_p4 = pnand %p140_p3, %p134_p0 }
   0xa   :  { %144 = shalt.err (!%p141_p4)
}
   0xb   :  { %s170_s15 = smov 64   ;;  %s171_s16 = smov 4  }
   0xc   :  { %21 = dma.hbm_to_vmem [thread:$0]  %s215_s0, 128, %s16_s13, [#allocation3], %s170_s15, %s170_s15, %s171_s16  }
   0xd   :  { %165 = dma.done.wait [#allocation3], 128  }
   0xe   :  { %166 = vsyncadd [#allocation3], 4294967168  ;;  %v114_v0 = vld [vmem:[#allocation2] sm:$0xff]   ;;  %vm33_vm0 = vcmask 261120   ;;  %vm87_vm1 = vcmask 257024   ;;  %s172_s22 = smov [#allocation5]  }
   0xf   :  { %v115_v1 = vunpack.c.l.bf16 %v114_v0  ;;  %v116_v2 = vunpack.c.h.bf16 %v114_v0  ;;  %v107_v22 = vld [vmem:[%s216_s1] ss:$0 sm:$0xff]  ;;  %s95_s23 = sshll.u32 %s172_s22, 4  ;;  %s96_s23 = int_to_ptr.vmem [resolvable:$true] %s95_s23 }
  0x10   :  { %v108_v24 = vld [vmem:[%s217_s2] ss:$0 sm:$0xff]  ;;  %s145_s1 = scalar_lea.vmem %s96_s23, 128  ;;  %p150_p6 = scmp.lt.s32.totalorder %s96_s23, %s96_s23 }
  0x11   :  { %v34_v3 = vsel %vm33_vm0, %v115_v1, 0.0  ;;  %v37_v4 = vsel %vm33_vm0, %v116_v2, 0.0  ;;  %p146_p5 = scmp.ne.s32.totalorder %s96_s23, %s145_s1  ;;  %p151_p7 = scmp.lt.s32.totalorder %s145_s1, %s145_s1 }
  0x12   :  { %35 = vadd.xlane.f32.xlu0 %v34_v3 }
  0x13   :  { %p152_p8 = por %p151_p7, %p150_p6 }
  0x15   :  { %p153_p9 = pnand %p152_p8, %p146_p5 }
  0x16   :  { %38 = vadd.xlane.f32.xlu0 %v37_v4 }
  0x9b   :  { %v36_v5 = vpop.xlane.xlu0 %35 }
  0x9c   :  { %v41_v6 = vmul.f32 0.03125, %v36_v5 }
  0x9e   :  { %v43_v7 = vsub.f32 %v115_v1, %v41_v6 }
  0x9f   :  { %v39_v8 = vpop.xlane.xlu0 %38 }
  0xa0   :  { %v42_v9 = vmul.f32 0.03125, %v39_v8  ;;  %v45_v10 = vmul.f32 %v43_v7, %v43_v7 }
  0xa2   :  { %v44_v11 = vsub.f32 %v116_v2, %v42_v9  ;;  %v47_v12 = vsel %vm33_vm0, %v45_v10, 0.0 }
  0xa3   :  { %48 = vadd.xlane.f32.xlu1 %v47_v12 }
  0xa4   :  { %v46_v13 = vmul.f32 %v44_v11, %v44_v11 }
  0xa6   :  { %v50_v14 = vsel %vm33_vm0, %v46_v13, 0.0 }
  0xa7   :  { %51 = vadd.xlane.f32.xlu1 %v50_v14 }
 0x12c   :  { %v49_v15 = vpop.xlane.xlu1 %48 }
 0x12d   :  { %v53_v16 = vmul.f32 0.03125, %v49_v15 }
 0x12f   :  { %v55_v17 = vadd.f32 1e-12, %v53_v16 }
 0x130   :  { %v52_v18 = vpop.xlane.xlu1 %51 }
 0x131   :  { %121 = vrsqrt.f32 %v55_v17  ;;  %v54_v19 = vmul.f32 0.03125, %v52_v18 }
 0x133   :  { %v56_v20 = vadd.f32 1e-12, %v54_v19 }
 0x135   :  { %123 = vrsqrt.f32 %v56_v20 }
 0x13e   :  { %v122_v21 = vpop.eup %121 }
 0x13f   :  { %v59_v23 = vmul.f32 %v122_v21, %v43_v7 }
 0x141   :  { %v68_v25 = vmul.f32 %v107_v22, %v59_v23 }
 0x142   :  { %v124_v26 = vpop.eup %123 }
 0x143   :  { %v60_v27 = vmul.f32 %v124_v26, %v44_v11  ;;  %v77_v28 = vadd.f32 %v108_v24, %v68_v25 }
 0x145   :  { %v69_v29 = vmul.f32 %v107_v22, %v60_v27  ;;  %v111_v30 = vpack.c.bf16 %v77_v28, %v77_v28 }
 0x147   :  { %v78_v31 = vadd.f32 %v108_v24, %v69_v29  ;;  %88 = vst.msk [vmem:[#allocation5] sm:$0xf] %vm87_vm1, %v111_v30 }
 0x149   :  { %v112_v32 = vpack.c.bf16 %v78_v31, %v78_v31 }
 0x14b   :  { %89 = vst.msk [vmem:[#allocation5 + $0x4] sm:$0xf] %vm87_vm1, %v112_v32 }
 0x14c   :  { %156 = shalt.err (!%p153_p9)
}
 0x14d   :  { %101 = dma.vmem_to_hbm [thread:$0]  %s96_s23, 128, %s218_s3, [#allocation4], %s170_s15, %s170_s15, %s171_s16  }
 0x14e   :  { %167 = dma.done.wait [#allocation4], 128  }
 0x14f   :  { %168 = vsyncadd [#allocation4], 4294967168 }
 0x150   :  { %105 = vsyncpa [#allocation3], 1 }
 0x151   :  { %106 = vsyncpa [#allocation4], 1 }

</bundles_post_ra>
